<compile_context>
chip_gen: v6e
topology: v6e:2x2x1
jax: 0.10.0
libtpu: 0.0.40
codegen_flags: <defaults>
</compile_context>

<pallas_src>
import functools

import jax
import jax.numpy as jnp
from jax import lax
from jax.experimental import pallas as pl
from jax.experimental.pallas import tpu as pltpu

LANE = 128


def _round_up(x, m):
    return ((x + m - 1) // m) * m


# ---------------------------------------------------------------------------
# Kernel 1: conv-as-matmul over one tile of im2col rows, fused with partial
# BatchNorm statistics (per-channel sum and sum-of-squares for this tile).
# ---------------------------------------------------------------------------
def _conv_stats_kernel(p_ref, w_ref, y_ref, sum_ref, sq_ref):
    y = jnp.dot(p_ref[...], w_ref[...], preferred_element_type=jnp.float32)
    y_ref[...] = y
    sum_ref[...] = jnp.sum(y, axis=0, keepdims=True)[None]        # [1, 1, Cpad]
    sq_ref[...] = jnp.sum(y * y, axis=0, keepdims=True)[None]     # [1, 1, Cpad]


# ---------------------------------------------------------------------------
# Kernel 2: streaming affine normalize (scale/shift precomputed from the batch
# statistics) + LeakyReLU(neg_slope). Pure elementwise, f32.
# ---------------------------------------------------------------------------
def _bn_lrelu_kernel(y_ref, scale_ref, shift_ref, o_ref, *, neg_slope):
    z = y_ref[...] * scale_ref[...] + shift_ref[...]
    o_ref[...] = jnp.where(z >= 0, z, neg_slope * z)


def _pick_tiles(P, Kpad, Cpad):
    """Largest P tile (multiple of 8, capped at 2048) fitting a conservative
    double-buffered VMEM budget. Smaller VMEM chips (v7x) get smaller tiles."""
    try:
        vmem_cap = pltpu.get_tpu_info().vmem_capacity_bytes
    except Exception:  # conservative (v7x-sized) fallback
        vmem_cap = 64 * 1024 * 1024
    vmem_limit = int(min(vmem_cap // 2, 64 * 1024 * 1024))
    budget = vmem_limit // 4                   # headroom for scratch / compiler
    resident = 2 * Kpad * Cpad * 2             # double-buffered bf16 weight block
    per_row = 2 * (Kpad * 2 + Cpad * 4)        # db-buffered bf16 patches + f32 y
    tile = (budget - resident) // per_row
    tile = int(max(8, min(2048, tile)))
    tile = (tile // 8) * 8
    tile = min(tile, _round_up(P, 8))
    return tile, vmem_limit


def unet_conv_block(x, w, b, gamma, beta, *, stride=2, eps=1e-5, neg_slope=0.2):
    # Conv bias is exactly cancelled by train-mode BatchNorm mean subtraction,
    # so it is dropped from the compute (kept in the signature for parity).
    del b

    N, Cin, H, W = x.shape
    Cout, _, kh, kw = w.shape
    ph, pw = kh // 2, kw // 2
    Hout = (H + 2 * ph - kh) // stride + 1
    Wout = (W + 2 * pw - kw) // stride + 1
    P = N * Hout * Wout
    K = Cin * kh * kw

    Kpad = _round_up(K, LANE)
    Cpad = _round_up(Cout, LANE)
    tile_p, vmem_limit = _pick_tiles(P, Kpad, Cpad)
    Ppad = _round_up(max(P, tile_p), tile_p)
    num_tiles = Ppad // tile_p

    # ---- glue: im2col directly in NHWC/(Cin,kh,kw) order, bf16 to halve HBM ----
    xq = x.astype(jnp.bfloat16)
    xp = jnp.pad(xq, ((0, 0), (0, 0), (ph, ph), (pw, pw)))
    xp = xp.transpose(0, 2, 3, 1)                                  # [N, Hp, Wp, Cin]
    taps = []
    for di in range(kh):
        for dj in range(kw):
            taps.append(xp[:, di:di + stride * Hout:stride,
                           dj:dj + stride * Wout:stride, :])
    # [N, Hout, Wout, Cin, kh*kw] -> [P, K]  (K ordered (Cin, kh, kw) = weight order)
    patches = jnp.stack(taps, axis=-1).reshape(P, K)
    patches = jnp.pad(patches, ((0, Ppad - P), (0, Kpad - K)))     # zero pad rows/K

    w_mat = w.reshape(Cout, K).T.astype(jnp.bfloat16)              # [K, Cout]
    w_mat = jnp.pad(w_mat, ((0, Kpad - K), (0, Cpad - Cout)))

    # ---- Pallas kernel 1: tiled MXU matmul + fused partial BN statistics ----
    y, part_sum, part_sq = pl.pallas_call(
        _conv_stats_kernel,
        out_shape=(
            jax.ShapeDtypeStruct((Ppad, Cpad), jnp.float32),
            jax.ShapeDtypeStruct((num_tiles, 1, Cpad), jnp.float32),
            jax.ShapeDtypeStruct((num_tiles, 1, Cpad), jnp.float32),
        ),
        grid=(num_tiles,),
        in_specs=[
            pl.BlockSpec((tile_p, Kpad), lambda i: (i, 0)),
            pl.BlockSpec((Kpad, Cpad), lambda i: (0, 0)),          # VMEM-resident
        ],
        out_specs=(
            pl.BlockSpec((tile_p, Cpad), lambda i: (i, 0)),
            pl.BlockSpec((1, 1, Cpad), lambda i: (i, 0, 0)),
            pl.BlockSpec((1, 1, Cpad), lambda i: (i, 0, 0)),
        ),
        compiler_params=pltpu.CompilerParams(
            dimension_semantics=("parallel",),
            vmem_limit_bytes=vmem_limit,
        ),
    )(patches, w_mat)

    # ---- tiny [Cpad]-sized glue: finalize batch stats -> scale/shift ----
    # Padded rows/channels are exact zeros (no bias), so dividing by the real P
    # gives correct train-mode (biased) statistics.
    mean = jnp.sum(part_sum[:, 0, :], axis=0) / P
    ey2 = jnp.sum(part_sq[:, 0, :], axis=0) / P
    var = jnp.maximum(ey2 - mean * mean, 0.0)
    g = jnp.pad(gamma.astype(jnp.float32), (0, Cpad - Cout))
    be = jnp.pad(beta.astype(jnp.float32), (0, Cpad - Cout))
    scale = g * lax.rsqrt(var + eps)
    shift = be - mean * scale
    scale = scale.reshape(1, Cpad)
    shift = shift.reshape(1, Cpad)

    # ---- Pallas kernel 2: streaming normalize + LeakyReLU ----
    z = pl.pallas_call(
        functools.partial(_bn_lrelu_kernel, neg_slope=neg_slope),
        out_shape=jax.ShapeDtypeStruct((Ppad, Cpad), jnp.float32),
        grid=(num_tiles,),
        in_specs=[
            pl.BlockSpec((tile_p, Cpad), lambda i: (i, 0)),
            pl.BlockSpec((1, Cpad), lambda i: (0, 0)),             # VMEM-resident
            pl.BlockSpec((1, Cpad), lambda i: (0, 0)),             # VMEM-resident
        ],
        out_specs=pl.BlockSpec((tile_p, Cpad), lambda i: (i, 0)),
        compiler_params=pltpu.CompilerParams(
            dimension_semantics=("parallel",),
            vmem_limit_bytes=vmem_limit,
        ),
    )(y, scale, shift)

    # Back to NCHW (module interface). When stacking blocks, prefer keeping the
    # NHWC layout end-to-end and only converting at model boundaries.
    return z[:P, :Cout].reshape(N, Hout, Wout, Cout).transpose(0, 3, 1, 2)


if __name__ == "__main__":
    key = jax.random.PRNGKey(0)
    k1, k2, k3 = jax.random.split(key, 3)

    N, Cin, H, W = 2, 4, 16, 16
    Cout, ksz = 8, 3

    x = jax.random.normal(k1, (N, Cin, H, W), jnp.float32)
    w = jax.random.normal(k2, (Cout, Cin, ksz, ksz), jnp.float32) * 0.1
    b = jax.random.normal(k3, (Cout,), jnp.float32) * 0.1
    gamma = jnp.ones((Cout,), jnp.float32)    # BatchNorm2d default init
    beta = jnp.zeros((Cout,), jnp.float32)

    out = jax.block_until_ready(unet_conv_block(x, w, b, gamma, beta))

    # plain-JAX reference (same bf16-quantized MXU operands, f32 everywhere else)
    xq = x.astype(jnp.bfloat16).astype(jnp.float32)
    wq = w.astype(jnp.bfloat16).astype(jnp.float32)
    ref = lax.conv_general_dilated(
        xq, wq, window_strides=(2, 2), padding=((1, 1), (1, 1)),
        dimension_numbers=("NCHW", "OIHW", "NCHW"),
    ) + b.reshape(1, Cout, 1, 1)
    m = jnp.mean(ref, axis=(0, 2, 3), keepdims=True)
    v = jnp.mean((ref - m) ** 2, axis=(0, 2, 3), keepdims=True)
    ref = (ref - m) * lax.rsqrt(v + 1e-5)
    ref = ref * gamma.reshape(1, Cout, 1, 1) + beta.reshape(1, Cout, 1, 1)
    ref = jnp.where(ref >= 0, ref, 0.2 * ref)

    assert out.shape == (N, Cout, H // 2, W // 2), out.shape
    err = float(jnp.max(jnp.abs(out - ref)))
    assert jnp.allclose(out, ref, atol=2e-3, rtol=2e-3), err
    print("KERNEL_OK")
</pallas_src>

<mosaic_0001>
module attributes {stable_mosaic.version = 11 : i64} {
  func.func @_conv_stats_kernel(%arg0: i32, %arg1: memref<128x128xbf16, #tpu.memory_space<vmem>>, %arg2: memref<128x128xbf16, #tpu.memory_space<vmem>>, %arg3: memref<128x128xf32, #tpu.memory_space<vmem>>, %arg4: memref<1x1x128xf32, #tpu.memory_space<vmem>>, %arg5: memref<1x1x128xf32, #tpu.memory_space<vmem>>) attributes {dimension_semantics = [#tpu.dimension_semantics<parallel>], iteration_bounds = array<i64: 1>, scalar_prefetch = 0 : i64, scratch_operands = 0 : i64, tpu.core_type = #tpu.core_type<tc>, window_params = [{transform_indices = @transform_0, window_bounds = array<i64: 128, 128>}, {pipeline_mode = #tpu.pipeline_mode<synchronous>, transform_indices = @transform_1, window_bounds = array<i64: 128, 128>}, {transform_indices = @transform_2, window_bounds = array<i64: 128, 128>}, {transform_indices = @transform_3, window_bounds = array<i64: 1, 1, 128>}, {transform_indices = @transform_4, window_bounds = array<i64: 1, 1, 128>}]} {
    %c0 = arith.constant 0 : index
    %c0_0 = arith.constant 0 : index
    %0 = vector.load %arg1[%c0, %c0_0] : memref<128x128xbf16, #tpu.memory_space<vmem>>, vector<128x128xbf16>
    %c0_1 = arith.constant 0 : index
    %c0_2 = arith.constant 0 : index
    %1 = vector.load %arg2[%c0_1, %c0_2] : memref<128x128xbf16, #tpu.memory_space<vmem>>, vector<128x128xbf16>
    %cst = arith.constant dense<0.000000e+00> : vector<128x128xf32>
    %2 = tpu.matmul %0, %1, %cst {dimension_numbers = #tpu.dot_dimension_numbers<[1], [0], [0], [1], [0, 0, 1, 1], [], []>} : vector<128x128xbf16>, vector<128x128xbf16>, vector<128x128xf32> -> vector<128x128xf32>
    %c0_3 = arith.constant 0 : index
    %c0_4 = arith.constant 0 : index
    %3 = vector.load %arg3[%c0_3, %c0_4] : memref<128x128xf32, #tpu.memory_space<vmem>>, vector<128x128xf32>
    tpu.vector_store %arg3[%c0_3, %c0_4], %2 {strides = array<i32>} : memref<128x128xf32, #tpu.memory_space<vmem>>, vector<128x128xf32>,
    %cst_5 = arith.constant dense<0.000000e+00> : vector<128xf32>
    %4 = vector.multi_reduction <add>, %2, %cst_5 [0] : vector<128x128xf32> to vector<128xf32>
    %5 = vector.shape_cast %4 : vector<128xf32> to vector<1x128xf32>
    %6 = vector.shape_cast %5 : vector<1x128xf32> to vector<1x1x128xf32>
    %c0_6 = arith.constant 0 : index
    %c0_7 = arith.constant 0 : index
    %c0_8 = arith.constant 0 : index
    %7 = vector.load %arg4[%c0_6, %c0_7, %c0_8] : memref<1x1x128xf32, #tpu.memory_space<vmem>>, vector<1x1x128xf32>
    tpu.vector_store %arg4[%c0_6, %c0_7, %c0_8], %6 {strides = array<i32>} : memref<1x1x128xf32, #tpu.memory_space<vmem>>, vector<1x1x128xf32>,
    %8 = arith.mulf %2, %2 : vector<128x128xf32>
    %cst_9 = arith.constant dense<0.000000e+00> : vector<128xf32>
    %9 = vector.multi_reduction <add>, %8, %cst_9 [0] : vector<128x128xf32> to vector<128xf32>
    %10 = vector.shape_cast %9 : vector<128xf32> to vector<1x128xf32>
    %11 = vector.shape_cast %10 : vector<1x128xf32> to vector<1x1x128xf32>
    %c0_10 = arith.constant 0 : index
    %c0_11 = arith.constant 0 : index
    %c0_12 = arith.constant 0 : index
    %12 = vector.load %arg5[%c0_10, %c0_11, %c0_12] : memref<1x1x128xf32, #tpu.memory_space<vmem>>, vector<1x1x128xf32>
    tpu.vector_store %arg5[%c0_10, %c0_11, %c0_12], %11 {strides = array<i32>} : memref<1x1x128xf32, #tpu.memory_space<vmem>>, vector<1x1x128xf32>,
    return
  }
  func.func @transform_0(%arg0: i32) -> (i32, i32) {
    %c0_i32 = arith.constant 0 : i32
    %c0_i32_0 = arith.constant 0 : i32
    return %arg0, %c0_i32 : i32, i32
  }
  func.func @transform_1(%arg0: i32) -> (i32, i32) {
    %c0_i32 = arith.constant 0 : i32
    %c0_i32_0 = arith.constant 0 : i32
    %c0_i32_1 = arith.constant 0 : i32
    return %c0_i32, %c0_i32_0 : i32, i32
  }
  func.func @transform_2(%arg0: i32) -> (i32, i32) {
    %c0_i32 = arith.constant 0 : i32
    %c0_i32_0 = arith.constant 0 : i32
    return %arg0, %c0_i32 : i32, i32
  }
  func.func @transform_3(%arg0: i32) -> (i32, i32, i32) {
    %c0_i32 = arith.constant 0 : i32
    %c0_i32_0 = arith.constant 0 : i32
    %c0_i32_1 = arith.constant 0 : i32
    return %arg0, %c0_i32, %c0_i32_0 : i32, i32, i32
  }
  func.func @transform_4(%arg0: i32) -> (i32, i32, i32) {
    %c0_i32 = arith.constant 0 : i32
    %c0_i32_0 = arith.constant 0 : i32
    %c0_i32_1 = arith.constant 0 : i32
    return %arg0, %c0_i32, %c0_i32_0 : i32, i32, i32
  }
}

</mosaic_0001>

<bundles_post_ra>
// kernel: tpu_custom_call.1
= control target key start
LH: loop header
LB: loop body
LE: loop exit
PB: predicated region body
PF: predicated region fallthrough
CT: control target
= control target key end

     0   :  { %10 = vsyncpa [#allocation3], 0  ;;  %s677_s0 = inlined_call_operand.hbm [shape: bf16[128,128], index: 0, kind: input, shape index: {}]   ;;  %s678_s1 = inlined_call_operand.hbm [shape: bf16[128,128], index: 1, kind: input, shape index: {}]   ;;  %s679_s2 = inlined_call_operand.hbm [shape: f32[128,128], index: 2, kind: output, shape index: {0}]   ;;  %s680_s3 = inlined_call_operand.hbm [shape: f32[1,1,128], index: 3, kind: output, shape index: {1}]   ;;  %s681_s4 = inlined_call_operand.hbm [shape: f32[1,1,128], index: 4, kind: output, shape index: {2}]  }
   0x1   :  { %11 = vsyncpa [#allocation6], 0 }
   0x2   :  { %12 = vsyncpa [#allocation4], 0 }
   0x3   :  { %13 = vsyncpa [#allocation9], 0  ;;  %s604_s15 = smov [#allocation2]  }
   0x4   :  { %s19_s16 = sshll.u32 %s604_s15, 4  ;;  %s20_s16 = int_to_ptr.vmem [resolvable:$true] %s19_s16 }
   0x5   :  { %s504_s17 = scalar_lea.vmem %s20_s16, 1024  ;;  %p509_p1 = scmp.lt.s32.totalorder %s20_s16, %s20_s16 }
   0x6   :  { %p505_p0 = scmp.ne.s32.totalorder %s20_s16, %s504_s17  ;;  %p510_p2 = scmp.lt.s32.totalorder %s504_s17, %s504_s17 }
   0x8   :  { %p511_p3 = por %p510_p2, %p509_p1 }
   0xa   :  { %p512_p4 = pnand %p511_p3, %p505_p0 }
   0xc   :  { %515 = shalt.err (!%p512_p4)
}
   0xd   :  { %s605_s18 = smov 64   ;;  %s606_s19 = smov 4  }
   0xe   :  { %25 = dma.hbm_to_vmem [thread:$0]  %s677_s0, 1024, %s20_s16, [#allocation3], %s605_s18, %s605_s18, %s606_s19  }
   0xf   :  { %s607_s22 = smov [#allocation5]  }
  0x10   :  { %s31_s23 = sshll.u32 %s607_s22, 4  ;;  %s32_s23 = int_to_ptr.vmem [resolvable:$true] %s31_s23 }
  0x11   :  { %s524_s24 = scalar_lea.vmem %s32_s23, 1024  ;;  %p529_p6 = scmp.lt.s32.totalorder %s32_s23, %s32_s23 }
  0x12   :  { %p525_p5 = scmp.ne.s32.totalorder %s32_s23, %s524_s24  ;;  %p530_p7 = scmp.lt.s32.totalorder %s524_s24, %s524_s24 }
  0x14   :  { %p531_p8 = por %p530_p7, %p529_p6 }
  0x16   :  { %p532_p9 = pnand %p531_p8, %p525_p5 }
  0x18   :  { %535 = shalt.err (!%p532_p9)
}
  0x19   :  { %37 = dma.hbm_to_vmem [thread:$0]  %s678_s1, 1024, %s32_s23, [#allocation6], %s605_s18, %s605_s18, %s606_s19  }
  0x1a   :  { %596 = dma.done.wait [#allocation3], 1024  }
  0x1b   :  { %597 = vsyncadd [#allocation3], 4294966272 }
  0x1c   :  { %598 = dma.done.wait [#allocation6], 1024  }
  0x1d   :  { %599 = vsyncadd [#allocation6], 4294966272  ;;  %v480_v0 = vld [vmem:[#allocation5 + $0x38] sm:$0xff]   ;;  %v481_v1 = vld [vmem:[#allocation5 + $0x30] sm:$0xff]   ;;  %s608_s0 = smov [#allocation7]  }
  0x1e   :  { %423 = vmatprep.subr.bf16.mxu0 %v480_v0  ;;  %455 = vmatprep.subr.bf16.mxu1 %v480_v0  ;;  %v482_v2 = vld [vmem:[#allocation5 + $0x28] sm:$0xff]   ;;  %v483_v3 = vld [vmem:[#allocation5 + $0x20] sm:$0xff]   ;;  %v484_v5 = vld [vmem:[#allocation5 + $0x18] sm:$0xff]   ;;  %s351_s1 = sshll.u32 %s608_s0, 4  ;;  %s352_s1 = int_to_ptr.vmem [resolvable:$true] %s351_s1 }
  0x1f   :  { %424 = vmatpush3.bf16.msra.mxu0 %v480_v0  ;;  %463 = vmatpush3.bf16.msra.mxu1 %v480_v0  ;;  %v488_v4 = vld [vmem:[#allocation2] sm:$0xff]   ;;  %v485_v7 = vld [vmem:[#allocation5 + $0x10] sm:$0xff]   ;;  %v486_v8 = vld [vmem:[#allocation5 + $0x8] sm:$0xff]   ;;  %s536_s27 = scalar_lea.vmem %s352_s1, 2048  ;;  %p541_p11 = scmp.lt.s32.totalorder %s352_s1, %s352_s1 }
  0x20   :  { %425 = vmatprep.subr.bf16.mxu0 %v481_v1  ;;  %456 = vmatprep.subr.bf16.mxu1 %v481_v1  ;;  %v492_v6 = vld [vmem:[#allocation2 + $0x20] sm:$0xff]   ;;  %v489_v10 = vld [vmem:[#allocation2 + $0x8] sm:$0xff]   ;;  %v490_v12 = vld [vmem:[#allocation2 + $0x10] sm:$0xff]   ;;  %p537_p10 = scmp.ne.s32.totalorder %s352_s1, %s536_s27  ;;  %p542_p12 = scmp.lt.s32.totalorder %s536_s27, %s536_s27 }
  0x21   :  { %439 = vmatprep.mubr.bf16.mxu0 %v488_v4  ;;  %447 = vmatprep.mubr.bf16.mxu1 %v492_v6  ;;  %v487_v9 = vld [vmem:[#allocation5] sm:$0xff]   ;;  %v493_v11 = vld [vmem:[#allocation2 + $0x28] sm:$0xff]   ;;  %v494_v13 = vld [vmem:[#allocation2 + $0x30] sm:$0xff]  }
  0x22   :  { %v491_v14 = vld [vmem:[#allocation2 + $0x18] sm:$0xff]   ;;  %p543_p13 = por %p542_p12, %p541_p11 }
  0x23   :  { %426 = vmatpush3.bf16.msra.mxu0 %v481_v1  ;;  %464 = vmatpush3.bf16.msra.mxu1 %v481_v1  ;;  %v495_v15 = vld [vmem:[#allocation2 + $0x38] sm:$0xff]  }
  0x24   :  { %427 = vmatprep.subr.bf16.mxu0 %v482_v2  ;;  %457 = vmatprep.subr.bf16.mxu1 %v482_v2  ;;  %p544_p0 = pnand %p543_p13, %p537_p10 }
  0x27   :  { %428 = vmatpush3.bf16.msra.mxu0 %v482_v2  ;;  %465 = vmatpush3.bf16.msra.mxu1 %v482_v2 }
  0x28   :  { %429 = vmatprep.subr.bf16.mxu0 %v483_v3  ;;  %458 = vmatprep.subr.bf16.mxu1 %v483_v3 }
  0x2b   :  { %430 = vmatpush3.bf16.msra.mxu0 %v483_v3  ;;  %466 = vmatpush3.bf16.msra.mxu1 %v483_v3 }
  0x2c   :  { %431 = vmatprep.subr.bf16.mxu0 %v484_v5  ;;  %459 = vmatprep.subr.bf16.mxu1 %v484_v5 }
  0x2f   :  { %432 = vmatpush3.bf16.msra.mxu0 %v484_v5  ;;  %467 = vmatpush3.bf16.msra.mxu1 %v484_v5 }
  0x30   :  { %433 = vmatprep.subr.bf16.mxu0 %v485_v7  ;;  %460 = vmatprep.subr.bf16.mxu1 %v485_v7 }
  0x33   :  { %434 = vmatpush3.bf16.msra.mxu0 %v485_v7  ;;  %468 = vmatpush3.bf16.msra.mxu1 %v485_v7 }
  0x34   :  { %435 = vmatprep.subr.bf16.mxu0 %v486_v8  ;;  %461 = vmatprep.subr.bf16.mxu1 %v486_v8 }
  0x37   :  { %436 = vmatpush3.bf16.msra.mxu0 %v486_v8  ;;  %469 = vmatpush3.bf16.msra.mxu1 %v486_v8 }
  0x38   :  { %437 = vmatprep.subr.bf16.mxu0 %v487_v9  ;;  %462 = vmatprep.subr.bf16.mxu1 %v487_v9 }
  0x3b   :  { %438 = vmatpush3.bf16.msra.mxu0 %v487_v9  ;;  %470 = vmatpush3.bf16.msra.mxu1 %v487_v9 }
  0x3e   :  { %440 = vmatmul.mubr.bf16.vlgmr.msra.gmra.mxu0 %v489_v10  ;;  %448 = vmatmul.mubr.bf16.vlgmr.msra.gmra.mxu1 %v493_v11 }
  0x3f   :  { %443 = vmatprep.mubr.bf16.mxu0 %v490_v12  ;;  %451 = vmatprep.mubr.bf16.mxu1 %v494_v13 }
  0x46   :  { %444 = vmatmul.mubr.bf16.gmra.mxu0 %v491_v14  ;;  %452 = vmatmul.mubr.bf16.gmra.mxu1 %v495_v15 }
  0xfe   :  { %v441_v16 = vpop.f32.mrf.mxu0  ;;  %v644_v17 = vpop.f32.mrf.mxu1 }
  0xff   :  { %272 = vst [vmem:[#allocation7 + $0x10] sm:$0xff] %v441_v16  ;;  %280 = vst [vmem:[#allocation7 + $0x50] sm:$0xff] %v644_v17  ;;  %v310_v29 = vmul.f32 %v441_v16, %v441_v16 }
 0x100   :  { %v207_v18 = vpop.f32.mrf.mxu0  ;;  %v647_v19 = vpop.f32.mrf.mxu1 }
 0x101   :  { %270 = vst [vmem:[#allocation7] sm:$0xff] %v207_v18  ;;  %278 = vst [vmem:[#allocation7 + $0x40] sm:$0xff] %v647_v19  ;;  %v308_v24 = vmul.f32 %v207_v18, %v207_v18 }
 0x102   :  { %v442_v20 = vpop.f32.mrf.mxu0  ;;  %v650_v21 = vpop.f32.mrf.mxu1 }
 0x103   :  { %273 = vst [vmem:[#allocation7 + $0x18] sm:$0xff] %v442_v20  ;;  %281 = vst [vmem:[#allocation7 + $0x58] sm:$0xff] %v650_v21  ;;  %v311_v34 = vmul.f32 %v442_v20, %v442_v20 }
 0x104   :  { %v210_v22 = vpop.f32.mrf.mxu0  ;;  %v242_v23 = vpop.f32.mrf.mxu1 }
 0x105   :  { %271 = vst [vmem:[#allocation7 + $0x8] sm:$0xff] %v210_v22  ;;  %v286_v25 = vadd.f32 %v210_v22, %v207_v18  ;;  %v309_v26 = vmul.f32 %v210_v22, %v210_v22  ;;  %279 = vst [vmem:[#allocation7 + $0x48] sm:$0xff] %v242_v23 }
 0x106   :  { %v445_v27 = vpop.f32.mrf.mxu0  ;;  %v653_v28 = vpop.f32.mrf.mxu1 }
 0x107   :  { %v287_v30 = vadd.f32 %v441_v16, %v286_v25  ;;  %v324_v31 = vadd.f32 %v309_v26, %v308_v24  ;;  %276 = vst [vmem:[#allocation7 + $0x30] sm:$0xff] %v445_v27  ;;  %284 = vst [vmem:[#allocation7 + $0x70] sm:$0xff] %v653_v28 }
 0x108   :  { %v223_v32 = vpop.f32.mrf.mxu0  ;;  %v255_v33 = vpop.f32.mrf.mxu1 }
 0x109   :  { %v325_v35 = vadd.f32 %v324_v31, %v310_v29  ;;  %274 = vst [vmem:[#allocation7 + $0x20] sm:$0xff] %v223_v32  ;;  %v288_v36 = vadd.f32 %v442_v20, %v287_v30  ;;  %282 = vst [vmem:[#allocation7 + $0x60] sm:$0xff] %v255_v33  ;;  %v312_v40 = vmul.f32 %v223_v32, %v223_v32 }
 0x10a   :  { %v446_v37 = vpop.f32.mrf.mxu0  ;;  %v454_v38 = vpop.f32.mrf.mxu1 }
 0x10b   :  { %v289_v39 = vadd.f32 %v288_v36, %v223_v32  ;;  %v326_v41 = vadd.f32 %v325_v35, %v311_v34  ;;  %277 = vst [vmem:[#allocation7 + $0x38] sm:$0xff] %v446_v37  ;;  %285 = vst [vmem:[#allocation7 + $0x78] sm:$0xff] %v454_v38 }
 0x10c   :  { %v226_v42 = vpop.f32.mrf.mxu0  ;;  %v258_v43 = vpop.f32.mrf.mxu1 }
 0x10d   :  { %v327_v44 = vadd.f32 %v326_v41, %v312_v40  ;;  %275 = vst [vmem:[#allocation7 + $0x28] sm:$0xff] %v226_v42  ;;  %v290_v45 = vadd.f32 %v289_v39, %v226_v42  ;;  %v313_v46 = vmul.f32 %v226_v42, %v226_v42  ;;  %283 = vst [vmem:[#allocation7 + $0x68] sm:$0xff] %v258_v43 }
 0x10e   :  { %547 = shalt.err (!%p544_p0)
}
 0x10f   :  { %s609_s28 = smov 128   ;;  %s610_s29 = smov 8   ;;  %v314_v47 = vmul.f32 %v445_v27, %v445_v27  ;;  %v291_v48 = vadd.f32 %v445_v27, %v290_v45  ;;  %v328_v49 = vadd.f32 %v327_v44, %v313_v46  ;;  %v315_v50 = vmul.f32 %v446_v37, %v446_v37 }
 0x110   :  { %357 = dma.vmem_to_hbm [thread:$0]  %s352_s1, 2048, %s679_s2, [#allocation4], %s609_s28, %s609_s28, %s610_s29   ;;  %v316_v53 = vmul.f32 %v647_v19, %v647_v19  ;;  %v317_v57 = vmul.f32 %v242_v23, %v242_v23  ;;  %v318_v59 = vmul.f32 %v644_v17, %v644_v17  ;;  %v319_v62 = vmul.f32 %v650_v21, %v650_v21 }
 0x111   :  { %v292_v51 = vadd.f32 %v446_v37, %v291_v48  ;;  %v329_v52 = vadd.f32 %v328_v49, %v314_v47  ;;  %v320_v2 = vmul.f32 %v255_v33, %v255_v33  ;;  %v321_v6 = vmul.f32 %v258_v43, %v258_v43  ;;  %s611_s2 = smov [#allocation8]   ;;  %s612_s7 = smov [#allocation10]  }
 0x112   :  { %v322_v7 = vmul.f32 %v653_v28, %v653_v28  ;;  %v323_v10 = vmul.f32 %v454_v38, %v454_v38  ;;  %s364_s6 = sshll.u32 %s611_s2, 4  ;;  %s374_s8 = sshll.u32 %s612_s7, 4  ;;  %s365_s6 = int_to_ptr.vmem [resolvable:$true] %s364_s6  ;;  %s375_s8 = int_to_ptr.vmem [resolvable:$true] %s374_s8 }
 0x113   :  { %v330_v54 = vadd.f32 %v329_v52, %v315_v50  ;;  %v293_v55 = vadd.f32 %v292_v51, %v647_v19  ;;  %s556_s9 = scalar_lea.vmem %s365_s6, 16  ;;  %s560_s10 = scalar_lea.vmem %s365_s6, 32 }
 0x114   :  { %p557_p1 = scmp.ne.s32.totalorder %s365_s6, %s556_s9  ;;  %p561_p2 = scmp.lt.s32.totalorder %s365_s6, %s365_s6 }
 0x115   :  { %v294_v56 = vadd.f32 %v293_v55, %v242_v23  ;;  %v331_v58 = vadd.f32 %v330_v54, %v316_v53  ;;  %p562_p3 = scmp.lt.s32.totalorder %s560_s10, %s556_s9 }
 0x117   :  { %v295_v60 = vadd.f32 %v644_v17, %v294_v56  ;;  %v332_v61 = vadd.f32 %v331_v58, %v317_v57  ;;  %p563_p4 = por %p562_p3, %p561_p2 }
 0x119   :  { %v333_v63 = vadd.f32 %v332_v61, %v318_v59  ;;  %v296_v0 = vadd.f32 %v650_v21, %v295_v60  ;;  %p564_p5 = pnand %p563_p4, %p557_p1 }
 0x11b   :  { %v297_v1 = vadd.f32 %v296_v0, %v255_v33  ;;  %v334_v3 = vadd.f32 %v333_v63, %v319_v62 }
 0x11d   :  { %v335_v4 = vadd.f32 %v334_v3, %v320_v2  ;;  %v298_v5 = vadd.f32 %v297_v1, %v258_v43 }
 0x11f   :  { %v299_v8 = vadd.f32 %v653_v28, %v298_v5  ;;  %v336_v9 = vadd.f32 %v335_v4, %v321_v6 }
 0x121   :  { %v300_v11 = vadd.f32 %v454_v38, %v299_v8  ;;  %v337_v12 = vadd.f32 %v336_v9, %v322_v7 }
 0x123   :  { %v301_v13 = vrot.slane %v300_v11, 4  ;;  %v338_v14 = vadd.f32 %v337_v12, %v323_v10 }
 0x125   :  { %v339_v15 = vrot.slane %v338_v14, 4  ;;  %v302_v16 = vadd.f32 %v301_v13, %v300_v11 }
 0x127   :  { %v303_v17 = vrot.slane %v302_v16, 2  ;;  %v340_v18 = vadd.f32 %v339_v15, %v338_v14 }
 0x129   :  { %v304_v19 = vadd.f32 %v303_v17, %v302_v16  ;;  %v341_v20 = vrot.slane %v340_v18, 2 }
 0x12b   :  { %v305_v21 = vrot.slane %v304_v19, 1  ;;  %v342_v22 = vadd.f32 %v341_v20, %v340_v18 }
 0x12d   :  { %v306_v23 = vadd.f32 %v305_v21, %v304_v19  ;;  %v343_v24 = vrot.slane %v342_v22, 1 }
 0x12f   :  { %307 = vst [vmem:[#allocation8] sm:$0x1] %v306_v23  ;;  %v344_v25 = vadd.f32 %v343_v24, %v342_v22 }
 0x130   :  { %567 = shalt.err (!%p564_p5)
}
 0x131   :  { %367 = dma.vmem_to_hbm [thread:$0]  %s365_s6, 16, %s680_s3, [#allocation9]   ;;  %345 = vst [vmem:[#allocation10] sm:$0x1] %v344_v25 }
 0x132   :  { %s576_s13 = scalar_lea.vmem %s375_s8, 16  ;;  %s580_s14 = scalar_lea.vmem %s375_s8, 32 }
 0x133   :  { %p577_p6 = scmp.ne.s32.totalorder %s375_s8, %s576_s13  ;;  %p581_p7 = scmp.lt.s32.totalorder %s375_s8, %s375_s8 }
 0x134   :  { %p582_p8 = scmp.lt.s32.totalorder %s580_s14, %s576_s13 }
 0x136   :  { %p583_p9 = por %p582_p8, %p581_p7 }
 0x138   :  { %p584_p10 = pnand %p583_p9, %p577_p6 }
 0x13a   :  { %587 = shalt.err (!%p584_p10)
}
 0x13b   :  { %377 = dma.vmem_to_hbm [thread:$0]  %s375_s8, 16, %s681_s4, [#allocation9]  }
 0x13c   :  { %600 = dma.done.wait [#allocation4], 2048  }
 0x13d   :  { %601 = vsyncadd [#allocation4], 4294965248 }
 0x13e   :  { %602 = dma.done.wait [#allocation9], 32  }
 0x13f   :  { %603 = vsyncadd [#allocation9], 4294967264 }
 0x140   :  { %387 = vsyncpa [#allocation3], 1 }
 0x141   :  { %388 = vsyncpa [#allocation6], 1 }
 0x142   :  { %389 = vsyncpa [#allocation4], 1 }
 0x143   :  { %390 = vsyncpa [#allocation9], 1 }

</bundles_post_ra>
